<compile_context>
chip_gen: v6e
topology: v6e:2x2x1
jax: 0.10.0
libtpu: 0.0.40
codegen_flags: <defaults>
</compile_context>

<pallas_src>
import functools

import jax
import jax.numpy as jnp
from jax import lax
from jax.experimental import pallas as pl
from jax.experimental.pallas import tpu as pltpu


HIDDEN = 1024          # fixed by the module definition
LEAKY_SLOPE = 0.01     # PyTorch nn.LeakyReLU default


def _round_up(x, m):
    return ((x + m - 1) // m) * m


def _cdiv(a, b):
    return -(-a // b)


def dann_kernel(x_ref, w1_ref, b1_ref, w2_ref, b2_ref, o_ref, *, add_b1):
    # x_ref : (TB, Kp)     f32/bf16 VMEM  (streamed batch tile; cast to bf16 here)
    # w1_ref: (Kp, 1024)   bf16     VMEM  (resident; padded row holds b1 when add_b1=False)
    # b1_ref: (1, 1024)    f32      VMEM  (resident; unused when bias is folded)
    # w2_ref: (1, 1024)    f32      VMEM  (resident; second Linear weight as a row)
    # b2_ref: (1,)         f32      SMEM  (scalar bias)
    # o_ref : (1, TB)      f32      VMEM  (lane-dense output tile)
    h = jnp.dot(x_ref[...].astype(jnp.bfloat16), w1_ref[...],
                preferred_element_type=jnp.float32)
    if add_b1:
        h = h + b1_ref[...]
    # LeakyReLU: mul + max (2 VALU ops/element).
    h = jnp.maximum(h, jnp.float32(LEAKY_SLOPE) * h)
    # Dropout(0.5): identity in eval/inference mode.
    # Second Linear (1024 -> 1) on the MXU with a lane-dense (1, TB) result.
    out = lax.dot_general(w2_ref[...], h, (((1,), (1,)), ((), ())),
                          preferred_element_type=jnp.float32)
    o_ref[...] = (out + b2_ref[0]).astype(o_ref.dtype)


def prepare_params(w1, b1, w2, b2):
    """One-time weight layout/dtype prep (hoisted out of the per-call path).

    w1: (emb_dim, 1024) stored (in, out) — i.e. PyTorch weight transposed.
    b1: (1024,), w2: (1024, 1), b2: (1,)

    When emb_dim % 128 != 0, w1 is zero-padded to a multiple of 128 and b1 is folded
    into padded row `emb_dim` (matched by a ones column in the padded x), so the kernel
    can skip the bias add.
    """
    emb_dim = w1.shape[0]
    k_pad = _round_up(emb_dim, 128)
    if k_pad != emb_dim:
        w1_p = jnp.zeros((k_pad, HIDDEN), jnp.bfloat16)
        w1_p = w1_p.at[:emb_dim, :].set(w1.astype(jnp.bfloat16))
        w1_p = w1_p.at[emb_dim, :].set(b1.astype(jnp.bfloat16))   # folded bias row
    else:
        w1_p = w1.astype(jnp.bfloat16)
    b1_row = b1.reshape(1, HIDDEN).astype(jnp.float32)
    w2_row = w2.reshape(1, HIDDEN).astype(jnp.float32)
    b2_s = b2.reshape(1).astype(jnp.float32)
    return w1_p, b1_row, w2_row, b2_s


def _vmem_budget_bytes():
    """Usable VMEM budget: ~85% of physical capacity (headroom for Mosaic scratch)."""
    try:
        info = pltpu.get_tpu_info()
        cap = int(getattr(info, "vmem_capacity_bytes", 0) or 0)
        if cap > 0:
            return int(cap * 0.85)
    except Exception:
        pass
    return 48 << 20   # conservative fallback: fits v7x's 64 MiB; v5e/v6e have 128 MiB


def _choose_tb(B, k_pad, x_bytes, budget, tb_max):
    """Pick a batch tile: as large as VMEM allows, minimal padding waste, grid>=2 when cheap."""
    # Pallas allocates 2 buffers per BlockSpec input -> count resident weights at 2x.
    resident = 2 * (k_pad * HIDDEN * 2) + 2 * 2 * (HIDDEN * 4)
    per_row = 2 * k_pad * x_bytes + HIDDEN * 4 + 2 * 4   # x tiles + f32 hidden + out tiles
    headroom = 4 << 20
    avail = budget - resident - headroom
    if avail > per_row * 128:
        tb_fit = (avail // per_row) // 128 * 128
    else:
        tb_fit = 128
    tb_cap = max(128, min(tb_max, tb_fit))

    b8 = _round_up(max(B, 1), 8)
    if b8 <= tb_cap:
        # Split into 2 tiles so the "parallel" batch axis shards across both TensorCores
        # on v7x, but only if the extra padding from 128-alignment stays small (<~12%).
        if b8 >= 256:
            tb2 = _round_up(_cdiv(b8, 2), 128)
            if 2 * tb2 - b8 <= max(8, b8 // 8):
                return tb2
        return b8
    ntiles = _cdiv(b8, tb_cap)
    return min(_round_up(_cdiv(b8, ntiles), 128), tb_cap)


@functools.partial(jax.jit, static_argnames=("tb_max",))
def dann_forward(x, w1_p, b1_row, w2_row, b2_s, *, tb_max=2048):
    """Fused DannDiscriminator forward (inference semantics) on pre-prepared params.

    x: (B, emb_dim) float32 (or bfloat16). Returns (B, 1) in x.dtype.
    """
    B, emb_dim = x.shape
    k_pad = w1_p.shape[0]
    fold_bias = (k_pad != emb_dim)            # b1 lives in w1_p's padded row
    x_bytes = 2 if fold_bias else x.dtype.itemsize

    budget = _vmem_budget_bytes()
    tb = _choose_tb(B, k_pad, x_bytes, budget, tb_max)
    b_pad = _round_up(B, tb)
    grid = (b_pad // tb,)

    if fold_bias or b_pad != B:
        # Padded bf16 copy required (K pad and/or batch pad); ones column drives the
        # folded bias when K is padded.
        x_p = jnp.zeros((b_pad, k_pad), jnp.bfloat16)
        x_p = x_p.at[:B, :emb_dim].set(x.astype(jnp.bfloat16))
        if fold_bias:
            x_p = x_p.at[:B, emb_dim].set(1.0)
        x_in = x_p
    else:
        x_in = x   # no pad needed: pass through, cast to bf16 inside the kernel

    kernel = functools.partial(dann_kernel, add_b1=not fold_bias)

    # VMEM accounting (inputs double-buffered, incl. the resident weights) + headroom.
    vmem_needed = (
        2 * tb * k_pad * x_in.dtype.itemsize   # x tiles
        + 2 * k_pad * HIDDEN * 2               # w1 (bf16)
        + 2 * 2 * HIDDEN * 4                   # b1 row, w2 row (f32)
        + tb * HIDDEN * 4                      # hidden activation live range (f32)
        + 2 * tb * 4                           # output tiles (f32)
        + (4 << 20)                            # Mosaic internal scratch headroom
    )
    vmem_limit = int(max(32 << 20, min(vmem_needed, budget)))

    cost = pl.CostEstimate(
        flops=2 * b_pad * k_pad * HIDDEN + 2 * b_pad * HIDDEN + 3 * b_pad * HIDDEN,
        transcendentals=0,
        bytes_accessed=(b_pad * k_pad * x_in.dtype.itemsize
                        + k_pad * HIDDEN * 2 + 2 * HIDDEN * 4 + b_pad * 4),
    )

    out = pl.pallas_call(
        kernel,
        out_shape=jax.ShapeDtypeStruct((1, b_pad), jnp.float32),
        grid_spec=pltpu.PrefetchScalarGridSpec(
            num_scalar_prefetch=0,
            grid=grid,
            in_specs=[
                pl.BlockSpec((tb, k_pad), lambda i: (i, 0)),        # x: streamed tiles
                pl.BlockSpec((k_pad, HIDDEN), lambda i: (0, 0)),    # w1: resident
                pl.BlockSpec((1, HIDDEN), lambda i: (0, 0)),        # b1 row: resident
                pl.BlockSpec((1, HIDDEN), lambda i: (0, 0)),        # w2 row: resident
                pl.BlockSpec(memory_space=pltpu.MemorySpace.SMEM),  # b2: scalar in SMEM
            ],
            out_specs=pl.BlockSpec((1, tb), lambda i: (0, i)),      # lane-dense output
        ),
        compiler_params=pltpu.CompilerParams(
            dimension_semantics=("parallel",),
            vmem_limit_bytes=vmem_limit,
        ),
        cost_estimate=cost,
    )(x_in, w1_p, b1_row, w2_row, b2_s)

    return out[0, :B].reshape(B, 1).astype(x.dtype)


def dann_discriminator(x, w1, b1, w2, b2, *, tb_max=2048):
    """One-shot convenience; for inference loops call prepare_params once + dann_forward."""
    return dann_forward(x, *prepare_params(w1, b1, w2, b2), tb_max=tb_max)


def init_params(key, emb_dim):
    """Deterministic init mimicking PyTorch nn.Linear defaults (uniform +/- 1/sqrt(fan_in))."""
    k1, k2, k3, k4 = jax.random.split(key, 4)
    bound1 = 1.0 / jnp.sqrt(emb_dim)
    bound2 = 1.0 / jnp.sqrt(HIDDEN)
    # Stored as (in, out) so the kernel does x @ W (equivalent to PyTorch x @ W^T).
    w1 = jax.random.uniform(k1, (emb_dim, HIDDEN), jnp.float32, -bound1, bound1)
    b1 = jax.random.uniform(k2, (HIDDEN,), jnp.float32, -bound1, bound1)
    w2 = jax.random.uniform(k3, (HIDDEN, 1), jnp.float32, -bound2, bound2)
    b2 = jax.random.uniform(k4, (1,), jnp.float32, -bound2, bound2)
    return w1, b1, w2, b2


if __name__ == "__main__":
    key = jax.random.PRNGKey(0)
    kx, kp = jax.random.split(key)

    B, emb_dim = 8, 32
    x = jax.random.normal(kx, (B, emb_dim), jnp.float32)
    w1, b1, w2, b2 = init_params(kp, emb_dim)

    params = prepare_params(w1, b1, w2, b2)   # weight prep hoisted out of per-call path
    out = dann_forward(x, *params)
    out = jax.block_until_ready(out)
    assert out.shape == (B, 1)

    # Reference matching kernel numerics: bf16 matmul inputs, f32 accumulation; when
    # emb_dim % 128 != 0 the bias is folded through the bf16 weight, so quantize b1 too.
    xq = x.astype(jnp.bfloat16).astype(jnp.float32)
    w1q = w1.astype(jnp.bfloat16).astype(jnp.float32)
    b1q = b1.astype(jnp.bfloat16).astype(jnp.float32) if emb_dim % 128 else b1
    h_ref = xq @ w1q + b1q[None, :]
    h_ref = jnp.where(h_ref > 0, h_ref, LEAKY_SLOPE * h_ref)
    ref_q = h_ref @ w2 + b2[None, :]
    assert jnp.allclose(out, ref_q, atol=3e-3, rtol=3e-3), "mismatch vs bf16-input reference"

    # Sanity check vs full-f32 reference (looser tolerance for the bf16 input cast).
    h32 = x @ w1 + b1[None, :]
    h32 = jnp.where(h32 > 0, h32, LEAKY_SLOPE * h32)
    ref_f32 = h32 @ w2 + b2[None, :]
    assert jnp.allclose(out, ref_f32, atol=5e-2, rtol=5e-2), "mismatch vs f32 reference"

    print("KERNEL_OK")
</pallas_src>

<mosaic_0001>
module attributes {stable_mosaic.version = 11 : i64} {
  func.func @dann_kernel(%arg0: i32, %arg1: memref<8x128xbf16, #tpu.memory_space<vmem>>, %arg2: memref<128x1024xbf16, #tpu.memory_space<vmem>>, %arg3: memref<1x1024xf32, #tpu.memory_space<vmem>>, %arg4: memref<1x1024xf32, #tpu.memory_space<vmem>>, %arg5: memref<1xf32, #tpu.memory_space<smem>>, %arg6: memref<1x8xf32, #tpu.memory_space<vmem>>) attributes {dimension_semantics = [#tpu.dimension_semantics<parallel>], iteration_bounds = array<i64: 1>, scalar_prefetch = 0 : i64, scratch_operands = 0 : i64, tpu.core_type = #tpu.core_type<tc>, window_params = [{transform_indices = @transform_0, window_bounds = array<i64: 8, 128>}, {pipeline_mode = #tpu.pipeline_mode<synchronous>, transform_indices = @transform_1, window_bounds = array<i64: 128, 1024>}, {pipeline_mode = #tpu.pipeline_mode<synchronous>, transform_indices = @transform_2, window_bounds = array<i64: 1, 1024>}, {pipeline_mode = #tpu.pipeline_mode<synchronous>, transform_indices = @transform_3, window_bounds = array<i64: 1, 1024>}, {transform_indices = @transform_4, window_bounds = array<i64: 1>}, {transform_indices = @transform_5, window_bounds = array<i64: 1, 8>}]} {
    %c0 = arith.constant 0 : index
    %c0_0 = arith.constant 0 : index
    %0 = vector.load %arg1[%c0, %c0_0] : memref<8x128xbf16, #tpu.memory_space<vmem>>, vector<8x128xbf16>
    %c0_1 = arith.constant 0 : index
    %c0_2 = arith.constant 0 : index
    %1 = vector.load %arg2[%c0_1, %c0_2] : memref<128x1024xbf16, #tpu.memory_space<vmem>>, vector<128x1024xbf16>
    %cst = arith.constant dense<0.000000e+00> : vector<8x1024xf32>
    %2 = tpu.matmul %0, %1, %cst {dimension_numbers = #tpu.dot_dimension_numbers<[1], [0], [0], [1], [0, 0, 1, 1], [], []>} : vector<8x128xbf16>, vector<128x1024xbf16>, vector<8x1024xf32> -> vector<8x1024xf32>
    %cst_3 = arith.constant 0.00999999977 : f32
    %3 = vector.broadcast %cst_3 : f32 to vector<8x1024xf32>
    %4 = arith.mulf %3, %2 : vector<8x1024xf32>
    %5 = arith.maximumf %2, %4 : vector<8x1024xf32>
    %c0_4 = arith.constant 0 : index
    %c0_5 = arith.constant 0 : index
    %6 = vector.load %arg4[%c0_4, %c0_5] : memref<1x1024xf32, #tpu.memory_space<vmem>>, vector<1x1024xf32>
    %cst_6 = arith.constant dense<0.000000e+00> : vector<1x8xf32>
    %7 = tpu.matmul %6, %5, %cst_6 {dimension_numbers = #tpu.dot_dimension_numbers<[1], [1], [0], [0], [0, 0, 1, 0], [], []>} : vector<1x1024xf32>, vector<8x1024xf32>, vector<1x8xf32> -> vector<1x8xf32>
    %c0_7 = arith.constant 0 : index
    %8 = memref.load %arg5[%c0_7] : memref<1xf32, #tpu.memory_space<smem>>
    %9 = vector.broadcast %8 : f32 to vector<1x8xf32>
    %10 = arith.addf %7, %9 : vector<1x8xf32>
    %c0_8 = arith.constant 0 : index
    %c0_9 = arith.constant 0 : index
    %11 = vector.load %arg6[%c0_8, %c0_9] : memref<1x8xf32, #tpu.memory_space<vmem>>, vector<1x8xf32>
    tpu.vector_store %arg6[%c0_8, %c0_9], %10 {strides = array<i32>} : memref<1x8xf32, #tpu.memory_space<vmem>>, vector<1x8xf32>,
    return
  }
  func.func @transform_0(%arg0: i32) -> (i32, i32) {
    %c0_i32 = arith.constant 0 : i32
    %c0_i32_0 = arith.constant 0 : i32
    return %arg0, %c0_i32 : i32, i32
  }
  func.func @transform_1(%arg0: i32) -> (i32, i32) {
    %c0_i32 = arith.constant 0 : i32
    %c0_i32_0 = arith.constant 0 : i32
    %c0_i32_1 = arith.constant 0 : i32
    return %c0_i32, %c0_i32_0 : i32, i32
  }
  func.func @transform_2(%arg0: i32) -> (i32, i32) {
    %c0_i32 = arith.constant 0 : i32
    %c0_i32_0 = arith.constant 0 : i32
    %c0_i32_1 = arith.constant 0 : i32
    return %c0_i32, %c0_i32_0 : i32, i32
  }
  func.func @transform_3(%arg0: i32) -> (i32, i32) {
    %c0_i32 = arith.constant 0 : i32
    %c0_i32_0 = arith.constant 0 : i32
    %c0_i32_1 = arith.constant 0 : i32
    return %c0_i32, %c0_i32_0 : i32, i32
  }
  func.func @transform_4(%arg0: i32) -> i32 {
    %c0_i32 = arith.constant 0 : i32
    %c0_i32_0 = arith.constant 0 : i32
    return %c0_i32 : i32
  }
  func.func @transform_5(%arg0: i32) -> (i32, i32) {
    %c0_i32 = arith.constant 0 : i32
    %c0_i32_0 = arith.constant 0 : i32
    return %c0_i32, %arg0 : i32, i32
  }
}

</mosaic_0001>

<bundles_post_ra>
// kernel: dann_forward.1
= control target key start
LH: loop header
LB: loop body
LE: loop exit
PB: predicated region body
PF: predicated region fallthrough
CT: control target
= control target key end

     0   :  { %11 = vsyncpa [#allocation4], 0  ;;  %s1116_s0 = inlined_call_operand.vmem [shape: bf16[8,128], index: 0, kind: input, shape index: {}]   ;;  %s1117_s1 = inlined_call_operand.hbm [shape: bf16[128,1024], index: 1, kind: input, shape index: {}]   ;;  %s1118_s2 = inlined_call_operand.vmem [shape: f32[1,1024], index: 2, kind: input, shape index: {}]   ;;  %s1119_s3 = inlined_call_operand.vmem [shape: f32[1,1024], index: 3, kind: input, shape index: {}]   ;;  %s1120_s4 = inlined_call_operand.<no memory space> [shape: f32[1], index: 4, kind: input, shape index: {}]   ;;  %s1121_s5 = inlined_call_operand.hbm [shape: f32[1,8], index: 5, kind: output, shape index: {}]  }
   0x1   :  { %12 = vsyncpa [#allocation5], 0  ;;  %s1056_s18 = smov [#allocation3]  }
   0x2   :  { %s20_s19 = sshll.u32 %s1056_s18, 4  ;;  %s21_s19 = int_to_ptr.vmem [resolvable:$true] %s20_s19 }
   0x3   :  { %s1020_s20 = scalar_lea.vmem %s21_s19, 8192  ;;  %p1025_p1 = scmp.lt.s32.totalorder %s21_s19, %s21_s19 }
   0x4   :  { %p1021_p0 = scmp.ne.s32.totalorder %s21_s19, %s1020_s20  ;;  %p1026_p2 = scmp.lt.s32.totalorder %s1020_s20, %s1020_s20 }
   0x6   :  { %p1027_p3 = por %p1026_p2, %p1025_p1 }
   0x8   :  { %p1028_p4 = pnand %p1027_p3, %p1021_p0 }
   0xa   :  { %1031 = shalt.err (!%p1028_p4)
}
   0xb   :  { %s1057_s2 = smov 512   ;;  %s1058_s21 = smov 32  }
   0xc   :  { %26 = dma.hbm_to_vmem [thread:$0]  %s1117_s1, 8192, %s21_s19, [#allocation4], %s1057_s2, %s1057_s2, %s1058_s21  }
   0xd   :  { %1052 = dma.done.wait [#allocation4], 8192  }
   0xe   :  { %1053 = vsyncadd [#allocation4], 4294959104  ;;  %v1059_v0 = vmov 0   ;;  %v94_v1 = vld [vmem:[#allocation3 + $0x1c0] sm:$0xff]  ;;  %v95_v3 = vld [vmem:[#allocation3 + $0x1c8] sm:$0xff]  ;;  %s1060_s27 = smov [#allocation6]  }
   0xf   :  { %454 = vmatprep.mubr.bf16.mxu0 %v1059_v0  ;;  %495 = vmatprep.mubr.bf16.mxu1 %v1059_v0  ;;  %v98_v2 = vld [vmem:[#allocation3 + $0x1e0] sm:$0xff]  ;;  %v99_v5 = vld [vmem:[#allocation3 + $0x1e8] sm:$0xff]  ;;  %v96_v63 = vld [vmem:[#allocation3 + $0x1d0] sm:$0xff]  ;;  %s934_s28 = sshll.u32 %s1060_s27, 4  ;;  %vm926_vm0 = vcmask 57344   ;;  %s935_s28 = int_to_ptr.vmem [resolvable:$true] %s934_s28 }
  0x10   :  { %v1000_v4 = vcombine.high %v94_v1, %v98_v2  ;;  %v999_v6 = vcombine.low %v94_v1, %v98_v2  ;;  %v86_v7 = vld [vmem:[#allocation3 + $0x180] sm:$0xff]  ;;  %v1002_v9 = vcombine.high %v95_v3, %v99_v5  ;;  %v1001_v10 = vcombine.low %v95_v3, %v99_v5  ;;  %v87_v12 = vld [vmem:[#allocation3 + $0x188] sm:$0xff]  ;;  %v100_v1 = vld [vmem:[#allocation3 + $0x1f0] sm:$0xff]  ;;  %s1032_s29 = scalar_lea.vmem %s935_s28, 16  ;;  %s1036_s30 = scalar_lea.vmem %s935_s28, 32 }
  0x11   :  { %v90_v8 = vld [vmem:[#allocation3 + $0x1a0] sm:$0xff]  ;;  %v91_v13 = vld [vmem:[#allocation3 + $0x1a8] sm:$0xff]  ;;  %v97_v2 = vld [vmem:[#allocation3 + $0x1d8] sm:$0xff]  ;;  %p1033_p5 = scmp.ne.s32.totalorder %s935_s28, %s1032_s29  ;;  %p1037_p6 = scmp.lt.s32.totalorder %s935_s28, %s935_s28 }
  0x12   :  { %v992_v11 = vcombine.high %v86_v7, %v90_v8  ;;  %v78_v14 = vld [vmem:[#allocation3 + $0x140] sm:$0xff]  ;;  %422 = vmatprep.subr.bf16.mxu0 %v1000_v4  ;;  %v994_v15 = vcombine.high %v87_v12, %v91_v13  ;;  %v79_v17 = vld [vmem:[#allocation3 + $0x148] sm:$0xff]  ;;  %463 = vmatprep.subr.bf16.mxu1 %v1002_v9  ;;  %v991_v19 = vcombine.low %v86_v7, %v90_v8  ;;  %v101_v3 = vld [vmem:[#allocation3 + $0x1f8] sm:$0xff]  ;;  %p1038_p7 = scmp.lt.s32.totalorder %s1036_s30, %s1032_s29 }
  0x13   :  { %v82_v16 = vld [vmem:[#allocation3 + $0x160] sm:$0xff]  ;;  %v83_v18 = vld [vmem:[#allocation3 + $0x168] sm:$0xff]  ;;  %423 = vmatpush1.bf16.msra.mxu0 %v999_v6  ;;  %464 = vmatpush1.bf16.msra.mxu1 %v1001_v10  ;;  %v993_v20 = vcombine.low %v87_v12, %v91_v13  ;;  %v1004_v6 = vcombine.high %v96_v63, %v100_v1  ;;  %v1006_v7 = vcombine.high %v97_v2, %v101_v3  ;;  %v88_v8 = vld [vmem:[#allocation3 + $0x190] sm:$0xff] }
  0x14   :  { %424 = vmatprep.subr.bf16.mxu0 %v992_v11  ;;  %v984_v21 = vcombine.high %v78_v14, %v82_v16  ;;  %465 = vmatprep.subr.bf16.mxu1 %v994_v15  ;;  %v986_v22 = vcombine.high %v79_v17, %v83_v18  ;;  %v70_v23 = vld [vmem:[#allocation3 + $0x100] sm:$0xff]  ;;  %v71_v25 = vld [vmem:[#allocation3 + $0x108] sm:$0xff]  ;;  %v983_v27 = vcombine.low %v78_v14, %v82_v16  ;;  %v92_v9 = vld [vmem:[#allocation3 + $0x1b0] sm:$0xff]  ;;  %p1039_p8 = por %p1038_p7, %p1037_p6 }
  0x15   :  { %v74_v24 = vld [vmem:[#allocation3 + $0x120] sm:$0xff]  ;;  %v75_v26 = vld [vmem:[#allocation3 + $0x128] sm:$0xff]  ;;  %v985_v28 = vcombine.low %v79_v17, %v83_v18  ;;  %v89_v10 = vld [vmem:[#allocation3 + $0x198] sm:$0xff]  ;;  %v1003_v13 = vcombine.low %v96_v63, %v100_v1  ;;  %v1005_v14 = vcombine.low %v97_v2, %v101_v3  ;;  %v996_v15 = vcombine.high %v88_v8, %v92_v9 }
  0x16   :  { %v976_v29 = vcombine.high %v70_v23, %v74_v24  ;;  %v978_v30 = vcombine.high %v71_v25, %v75_v26  ;;  %v62_v31 = vld [vmem:[#allocation3 + $0xc0] sm:$0xff]  ;;  %v63_v33 = vld [vmem:[#allocation3 + $0xc8] sm:$0xff]  ;;  %v975_v35 = vcombine.low %v70_v23, %v74_v24  ;;  %v977_v36 = vcombine.low %v71_v25, %v75_v26  ;;  %v93_v11 = vld [vmem:[#allocation3 + $0x1b8] sm:$0xff]  ;;  %p1040_p9 = pnand %p1039_p8, %p1033_p5 }
  0x17   :  { %425 = vmatpush1.bf16.msra.mxu0 %v991_v19  ;;  %466 = vmatpush1.bf16.msra.mxu1 %v993_v20  ;;  %v66_v32 = vld [vmem:[#allocation3 + $0xe0] sm:$0xff]  ;;  %v67_v34 = vld [vmem:[#allocation3 + $0xe8] sm:$0xff]  ;;  %v998_v16 = vcombine.high %v89_v10, %v93_v11  ;;  %v80_v17 = vld [vmem:[#allocation3 + $0x150] sm:$0xff]  ;;  %v606_v3 = vlaneseq }
  0x18   :  { %426 = vmatprep.subr.bf16.mxu0 %v984_v21  ;;  %467 = vmatprep.subr.bf16.mxu1 %v986_v22  ;;  %v968_v37 = vcombine.high %v62_v31, %v66_v32  ;;  %v970_v38 = vcombine.high %v63_v33, %v67_v34  ;;  %v54_v39 = vld [vmem:[#allocation3 + $0x80] sm:$0xff]  ;;  %v55_v41 = vld [vmem:[#allocation3 + $0x88] sm:$0xff]  ;;  %v967_v43 = vcombine.low %v62_v31, %v66_v32  ;;  %v84_v18 = vld [vmem:[#allocation3 + $0x170] sm:$0xff] }
  0x19   :  { %v58_v40 = vld [vmem:[#allocation3 + $0xa0] sm:$0xff]  ;;  %v59_v42 = vld [vmem:[#allocation3 + $0xa8] sm:$0xff]  ;;  %v969_v44 = vcombine.low %v63_v33, %v67_v34  ;;  %v81_v19 = vld [vmem:[#allocation3 + $0x158] sm:$0xff]  ;;  %v995_v21 = vcombine.low %v88_v8, %v92_v9  ;;  %v997_v22 = vcombine.low %v89_v10, %v93_v11  ;;  %v988_v23 = vcombine.high %v80_v17, %v84_v18 }
  0x1a   :  { %v960_v45 = vcombine.high %v54_v39, %v58_v40  ;;  %v962_v46 = vcombine.high %v55_v41, %v59_v42  ;;  %v46_v47 = vld [vmem:[#allocation3 + $0x40] sm:$0xff]  ;;  %v47_v49 = vld [vmem:[#allocation3 + $0x48] sm:$0xff]  ;;  %v959_v51 = vcombine.low %v54_v39, %v58_v40  ;;  %v961_v52 = vcombine.low %v55_v41, %v59_v42  ;;  %v85_v20 = vld [vmem:[#allocation3 + $0x178] sm:$0xff] }
  0x1b   :  { %427 = vmatpush1.bf16.msra.mxu0 %v983_v27  ;;  %468 = vmatpush1.bf16.msra.mxu1 %v985_v28  ;;  %v50_v48 = vld [vmem:[#allocation3 + $0x60] sm:$0xff]  ;;  %v51_v50 = vld [vmem:[#allocation3 + $0x68] sm:$0xff]  ;;  %v990_v24 = vcombine.high %v81_v19, %v85_v20  ;;  %v72_v25 = vld [vmem:[#allocation3 + $0x110] sm:$0xff] }
  0x1c   :  { %428 = vmatprep.subr.bf16.mxu0 %v976_v29  ;;  %469 = vmatprep.subr.bf16.mxu1 %v978_v30  ;;  %v952_v53 = vcombine.high %v46_v47, %v50_v48  ;;  %v954_v54 = vcombine.high %v47_v49, %v51_v50  ;;  %v38_v55 = vld [vmem:[#allocation3] sm:$0xff]  ;;  %v39_v57 = vld [vmem:[#allocation3 + $0x8] sm:$0xff]  ;;  %v951_v59 = vcombine.low %v46_v47, %v50_v48  ;;  %v76_v26 = vld [vmem:[#allocation3 + $0x130] sm:$0xff] }
  0x1d   :  { %v42_v56 = vld [vmem:[#allocation3 + $0x20] sm:$0xff]  ;;  %v43_v58 = vld [vmem:[#allocation3 + $0x28] sm:$0xff]  ;;  %v953_v60 = vcombine.low %v47_v49, %v51_v50  ;;  %v73_v27 = vld [vmem:[#allocation3 + $0x118] sm:$0xff]  ;;  %v987_v29 = vcombine.low %v80_v17, %v84_v18  ;;  %v989_v30 = vcombine.low %v81_v19, %v85_v20  ;;  %v980_v31 = vcombine.high %v72_v25, %v76_v26 }
  0x1e   :  { %v944_v61 = vcombine.high %v38_v55, %v42_v56  ;;  %v946_v62 = vcombine.high %v39_v57, %v43_v58  ;;  %v943_v4 = vcombine.low %v38_v55, %v42_v56  ;;  %v945_v5 = vcombine.low %v39_v57, %v43_v58  ;;  %v1099_v12 = vld [vmem:[%s1116_s0] sm:$0xf]  ;;  %v77_v28 = vld [vmem:[#allocation3 + $0x138] sm:$0xff]  ;;  %v64_v33 = vld [vmem:[#allocation3 + $0xd0] sm:$0xff] }
  0x1f   :  { %429 = vmatpush1.bf16.msra.mxu0 %v975_v35  ;;  %470 = vmatpush1.bf16.msra.mxu1 %v977_v36  ;;  %v982_v32 = vcombine.high %v73_v27, %v77_v28  ;;  %v68_v34 = vld [vmem:[#allocation3 + $0xf0] sm:$0xff]  ;;  %v65_v35 = vld [vmem:[#allocation3 + $0xd8] sm:$0xff] }
  0x20   :  { %430 = vmatprep.subr.bf16.mxu0 %v968_v37  ;;  %471 = vmatprep.subr.bf16.mxu1 %v970_v38  ;;  %v69_v36 = vld [vmem:[#allocation3 + $0xf8] sm:$0xff]  ;;  %v979_v37 = vcombine.low %v72_v25, %v76_v26  ;;  %v981_v38 = vcombine.low %v73_v27, %v77_v28  ;;  %v972_v39 = vcombine.high %v64_v33, %v68_v34  ;;  %v56_v40 = vld [vmem:[#allocation3 + $0x90] sm:$0xff] }
  0x21   :  { %v60_v41 = vld [vmem:[#allocation3 + $0xb0] sm:$0xff]  ;;  %v57_v42 = vld [vmem:[#allocation3 + $0x98] sm:$0xff] }
  0x22   :  { %v48_v48 = vld [vmem:[#allocation3 + $0x50] sm:$0xff]  ;;  %v49_v50 = vld [vmem:[#allocation3 + $0x58] sm:$0xff] }
  0x23   :  { %431 = vmatpush1.bf16.msra.mxu0 %v967_v43  ;;  %472 = vmatpush1.bf16.msra.mxu1 %v969_v44  ;;  %v61_v43 = vld [vmem:[#allocation3 + $0xb8] sm:$0xff]  ;;  %v971_v44 = vcombine.low %v64_v33, %v68_v34  ;;  %v52_v49 = vld [vmem:[#allocation3 + $0x70] sm:$0xff] }
  0x24   :  { %432 = vmatprep.subr.bf16.mxu0 %v960_v45  ;;  %473 = vmatprep.subr.bf16.mxu1 %v962_v46  ;;  %v973_v45 = vcombine.low %v65_v35, %v69_v36  ;;  %v964_v46 = vcombine.high %v56_v40, %v60_v41  ;;  %v966_v47 = vcombine.high %v57_v42, %v61_v43  ;;  %v40_v56 = vld [vmem:[#allocation3 + $0x10] sm:$0xff]  ;;  %v41_v58 = vld [vmem:[#allocation3 + $0x18] sm:$0xff] }
  0x25   :  { %v44_v57 = vld [vmem:[#allocation3 + $0x30] sm:$0xff] }
  0x26   :  { %v947_v1 = vcombine.low %v40_v56, %v44_v57 }
  0x27   :  { %433 = vmatpush1.bf16.msra.mxu0 %v959_v51  ;;  %474 = vmatpush1.bf16.msra.mxu1 %v961_v52  ;;  %v53_v51 = vld [vmem:[#allocation3 + $0x78] sm:$0xff]  ;;  %v963_v52 = vcombine.low %v56_v40, %v60_v41 }
  0x28   :  { %434 = vmatprep.subr.bf16.mxu0 %v952_v53  ;;  %475 = vmatprep.subr.bf16.mxu1 %v954_v54  ;;  %v965_v53 = vcombine.low %v57_v42, %v61_v43  ;;  %v956_v54 = vcombine.high %v48_v48, %v52_v49  ;;  %v958_v55 = vcombine.high %v49_v50, %v53_v51 }
  0x2b   :  { %435 = vmatpush1.bf16.msra.mxu0 %v951_v59  ;;  %476 = vmatpush1.bf16.msra.mxu1 %v953_v60  ;;  %v45_v59 = vld [vmem:[#allocation3 + $0x38] sm:$0xff]  ;;  %v955_v60 = vcombine.low %v48_v48, %v52_v49 }
  0x2c   :  { %436 = vmatprep.subr.bf16.mxu0 %v944_v61  ;;  %477 = vmatprep.subr.bf16.mxu1 %v946_v62  ;;  %v957_v61 = vcombine.low %v49_v50, %v53_v51  ;;  %v948_v62 = vcombine.high %v40_v56, %v44_v57  ;;  %v950_v63 = vcombine.high %v41_v58, %v45_v59  ;;  %v604_v57 = vstv %s1120_s4 }
  0x2d   :  { %v949_v2 = vcombine.low %v41_v58, %v45_v59 }
  0x2f   :  { %437 = vmatpush1.bf16.msra.mxu0 %v943_v4  ;;  %478 = vmatpush1.bf16.msra.mxu1 %v945_v5  ;;  %v607_v4 = vshrl.u32 %v606_v3, 7 }
  0x30   :  { %504 = vmatprep.subr.bf16.mxu0 %v1004_v6  ;;  %545 = vmatprep.subr.bf16.mxu1 %v1006_v7  ;;  %v602_v6 = vld [vmem:[%s1119_s3] sm:$0xff] }
  0x31   :  { %v612_v5 = vsub.s32 1, %v607_v4  ;;  %v608_v7 = vsub.s32 0, %v607_v4  ;;  %v620_v9 = vsub.s32 3, %v607_v4  ;;  %v616_v11 = vsub.s32 2, %v607_v4 }
  0x32   :  { %455 = vmatmul.mubr.bf16.vlgmr.msra.gmra.mxu0 %v1099_v12  ;;  %496 = vmatmul.mubr.bf16.vlgmr.msra.gmra.mxu1 %v1099_v12  ;;  %v624_v17 = vsub.s32 4, %v607_v4 }
  0x33   :  { %505 = vmatpush1.bf16.msra.mxu0 %v1003_v13  ;;  %546 = vmatpush1.bf16.msra.mxu1 %v1005_v14  ;;  %v613_v8 = vrot.slane %v602_v6, %v612_v5  ;;  %v609_v10 = vrot.slane %v602_v6, %v608_v7  ;;  %v621_v13 = vrot.slane %v602_v6, %v620_v9 }
  0x34   :  { %506 = vmatprep.subr.bf16.mxu0 %v996_v15  ;;  %547 = vmatprep.subr.bf16.mxu1 %v998_v16  ;;  %v617_v14 = vrot.slane %v602_v6, %v616_v11  ;;  %v628_v15 = vsub.s32 5, %v607_v4  ;;  %v636_v16 = vsub.s32 7, %v607_v4  ;;  %v625_v20 = vrot.slane %v602_v6, %v624_v17 }
  0x35   :  { %536 = vmatprep.mubr.bf16.mxu0 %v1059_v0  ;;  %577 = vmatprep.mubr.bf16.mxu1 %v1059_v0  ;;  %v974_v0 = vcombine.high %v65_v35, %v69_v36 }
  0x36   :  { %v629_v18 = vrot.slane %v602_v6, %v628_v15  ;;  %v637_v19 = vrot.slane %v602_v6, %v636_v16 }
  0x37   :  { %507 = vmatpush1.bf16.msra.mxu0 %v995_v21  ;;  %548 = vmatpush1.bf16.msra.mxu1 %v997_v22 }
  0x38   :  { %508 = vmatprep.subr.bf16.mxu0 %v988_v23  ;;  %549 = vmatprep.subr.bf16.mxu1 %v990_v24 }
  0x3b   :  { %509 = vmatpush1.bf16.msra.mxu0 %v987_v29  ;;  %550 = vmatpush1.bf16.msra.mxu1 %v989_v30 }
  0x3c   :  { %510 = vmatprep.subr.bf16.mxu0 %v980_v31  ;;  %551 = vmatprep.subr.bf16.mxu1 %v982_v32 }
  0x3f   :  { %511 = vmatpush1.bf16.msra.mxu0 %v979_v37  ;;  %552 = vmatpush1.bf16.msra.mxu1 %v981_v38 }
  0x40   :  { %512 = vmatprep.subr.bf16.mxu0 %v972_v39  ;;  %553 = vmatprep.subr.bf16.mxu1 %v974_v0 }
  0x43   :  { %513 = vmatpush1.bf16.msra.mxu0 %v971_v44  ;;  %554 = vmatpush1.bf16.msra.mxu1 %v973_v45 }
  0x44   :  { %514 = vmatprep.subr.bf16.mxu0 %v964_v46  ;;  %555 = vmatprep.subr.bf16.mxu1 %v966_v47 }
  0x47   :  { %515 = vmatpush1.bf16.msra.mxu0 %v963_v52  ;;  %556 = vmatpush1.bf16.msra.mxu1 %v965_v53 }
  0x48   :  { %516 = vmatprep.subr.bf16.mxu0 %v956_v54  ;;  %557 = vmatprep.subr.bf16.mxu1 %v958_v55 }
  0x4b   :  { %517 = vmatpush1.bf16.msra.mxu0 %v955_v60  ;;  %558 = vmatpush1.bf16.msra.mxu1 %v957_v61 }
  0x4c   :  { %518 = vmatprep.subr.bf16.mxu0 %v948_v62  ;;  %559 = vmatprep.subr.bf16.mxu1 %v950_v63 }
  0x4f   :  { %519 = vmatpush1.bf16.msra.mxu0 %v947_v1  ;;  %560 = vmatpush1.bf16.msra.mxu1 %v949_v2 }
  0x52   :  { %537 = vmatmul.mubr.bf16.vlgmr.msra.gmra.mxu0 %v1099_v12  ;;  %578 = vmatmul.mubr.bf16.vlgmr.msra.gmra.mxu1 %v1099_v12  ;;  %v632_v12 = vsub.s32 6, %v607_v4 }
  0x53   :  { %710 = vmatprep.mubr.f32.mxu0 %v613_v8  ;;  %780 = vmatprep.mubr.f32.mxu1 %v621_v13 }
  0x54   :  { %v633_v21 = vrot.slane %v602_v6, %v632_v12 }
  0xf2   :  { %v456_v22 = vpop.f32.mrf.mxu0  ;;  %v497_v23 = vpop.f32.mrf.mxu1 }
  0xf3   :  { %v586_v24 = vmul.f32 0.01, %v456_v22  ;;  %v588_v26 = vmul.f32 0.01, %v497_v23 }
  0xf4   :  { %v458_v25 = vpop.f32.mrf.mxu0  ;;  %v499_v28 = vpop.f32.mrf.mxu1 }
  0xf5   :  { %v587_v27 = vmul.f32 0.01, %v458_v25  ;;  %v589_v29 = vmul.f32 0.01, %v499_v28  ;;  %v594_v33 = vmax.f32 %v456_v22, %v586_v24  ;;  %v596_v36 = vmax.f32 %v497_v23, %v588_v26 }
  0xf6   :  { %v460_v30 = vpop.f32.mrf.mxu0  ;;  %v501_v32 = vpop.f32.mrf.mxu1 }
  0xf7   :  { %v595_v31 = vmax.f32 %v458_v25, %v587_v27  ;;  %v597_v34 = vmax.f32 %v499_v28, %v589_v29 }
  0xf8   :  { %v461_v35 = vpop.f32.mrf.mxu0  ;;  %v502_v37 = vpop.f32.mrf.mxu1 }
  0xf9   :  { %676 = vmatprep.subr.mxu0 %v595_v31  ;;  %746 = vmatprep.subr.mxu1 %v597_v34 }
  0xfa   :  { %677 = vmatpush1.xpose.msra.mxu0 %v594_v33  ;;  %747 = vmatpush1.xpose.msra.mxu1 %v596_v36 }
  0xfd   :  { %711 = vmatmul.mubr.f32.vlgmr.msra.gmra.mxu0 %v609_v10  ;;  %781 = vmatmul.mubr.f32.vlgmr.msra.gmra.mxu1 %v617_v14 }
  0xfe   :  { %850 = vmatprep.mubr.f32.mxu0 %v629_v18  ;;  %920 = vmatprep.mubr.f32.mxu1 %v637_v19 }
 0x112   :  { %v538_v38 = vpop.f32.mrf.mxu0  ;;  %v579_v39 = vpop.f32.mrf.mxu1 }
 0x113   :  { %v590_v0 = vmul.f32 0.01, %v538_v38  ;;  %v592_v41 = vmul.f32 0.01, %v579_v39 }
 0x114   :  { %v540_v40 = vpop.f32.mrf.mxu0  ;;  %v581_v43 = vpop.f32.mrf.mxu1 }
 0x115   :  { %v591_v42 = vmul.f32 0.01, %v540_v40  ;;  %v593_v44 = vmul.f32 0.01, %v581_v43  ;;  %v598_v48 = vmax.f32 %v538_v38, %v590_v0  ;;  %v600_v51 = vmax.f32 %v579_v39, %v592_v41 }
 0x116   :  { %v542_v45 = vpop.f32.mrf.mxu0  ;;  %v583_v47 = vpop.f32.mrf.mxu1 }
 0x117   :  { %v599_v46 = vmax.f32 %v540_v40, %v591_v42  ;;  %v601_v49 = vmax.f32 %v581_v43, %v593_v44 }
 0x118   :  { %v543_v50 = vpop.f32.mrf.mxu0  ;;  %v584_v52 = vpop.f32.mrf.mxu1 }
 0x119   :  { %816 = vmatprep.subr.mxu0 %v599_v46  ;;  %886 = vmatprep.subr.mxu1 %v601_v49 }
 0x11a   :  { %817 = vmatpush1.xpose.msra.mxu0 %v598_v48  ;;  %887 = vmatpush1.xpose.msra.mxu1 %v600_v51 }
 0x11d   :  { %851 = vmatmul.mubr.f32.vlgmr.msra.gmra.mxu0 %v625_v20  ;;  %921 = vmatmul.mubr.f32.vlgmr.msra.gmra.mxu1 %v633_v21 }
 0x1bd   :  { %v712_v53 = vpop.f32.mrf.mxu0  ;;  %v782_v54 = vpop.f32.mrf.mxu1 }
 0x1be   :  { %v713_v58 = vadd.f32 %v712_v53, %v604_v57 }
 0x1bf   :  { %v714_v55 = vpop.f32.mrf.mxu0  ;;  %v784_v56 = vpop.f32.mrf.mxu1 }
 0x1c0   :  { %v783_v59 = vadd.f32 %v782_v54, %v713_v58 }
 0x1dd   :  { %v852_v60 = vpop.f32.mrf.mxu0  ;;  %v922_v62 = vpop.f32.mrf.mxu1 }
 0x1de   :  { %v853_v61 = vadd.f32 %v852_v60, %v783_v59 }
 0x1df   :  { %v854_v63 = vpop.f32.mrf.mxu0  ;;  %v924_v2 = vpop.f32.mrf.mxu1 }
 0x1e0   :  { %v923_v1 = vadd.f32 %v922_v62, %v853_v61 }
 0x1e2   :  { %927 = vst.msk [vmem:[#allocation6] sm:$0x1] %vm926_vm0, %v923_v1 }
 0x1e3   :  { %1043 = shalt.err (!%p1040_p9)
}
 0x1e4   :  { %937 = dma.vmem_to_hbm [thread:$0]  %s935_s28, 16, %s1121_s5, [#allocation5]  }
 0x1e5   :  { %1054 = dma.done.wait [#allocation5], 16  }
 0x1e6   :  { %1055 = vsyncadd [#allocation5], 4294967280 }
 0x1e7   :  { %941 = vsyncpa [#allocation4], 1 }
 0x1e8   :  { %942 = vsyncpa [#allocation5], 1 }

</bundles_post_ra>
